<compile_context>
chip_gen: v6e
topology: v6e:2x2x1
jax: 0.10.0
libtpu: 0.0.40
codegen_flags: <defaults>
</compile_context>

<pallas_src>
import numpy as np
import jax
import jax.numpy as jnp
from jax.experimental import pallas as pl
from jax.experimental.pallas import tpu as pltpu


# ---------------------------------------------------------------------------
# Constant builders (all static, derived from shapes / flags)
# ---------------------------------------------------------------------------
def _round_up(a, b):
    return (a + b - 1) // b * b


def _triangular_mean_masks(H, W, flip):
    """Normalized masks (2, H*W): row 0 = strict upper (offset=+1), row 1 = strict lower (offset=-1)."""
    i, j = np.meshgrid(np.arange(H), np.arange(W), indexing="ij")
    up = j > i
    lw = j < i
    if flip:
        # mean over triangles of flip(x, axis=W)  ==  mean over column-reversed masks of x
        up = up[:, ::-1]
        lw = lw[:, ::-1]
    n_up = max(int(up.sum()), 1)
    n_lw = max(int(lw.sum()), 1)
    m = np.stack(
        [up.reshape(-1).astype(np.float32) / n_up,
         lw.reshape(-1).astype(np.float32) / n_lw],
        axis=0,
    )
    return jnp.asarray(m)  # (2, H*W) float32


def _adaptive_pool_indices(in_size, out_size):
    """Clamped gather indices replicating torch AdaptiveMaxPool start/end windows."""
    i = np.arange(out_size)
    starts = (i * in_size) // out_size
    ends = ((i + 1) * in_size + out_size - 1) // out_size
    lens = ends - starts
    K = int(lens.max())
    idx = starts[:, None] + np.minimum(np.arange(K)[None, :], (lens - 1)[:, None])
    return idx.astype(np.int32)  # (out_size, K)


def _triangular_flat_indices(T):
    """Flat (row-major) indices of strict upper / strict lower triangles of a TxT map,
    ordered rows-then-columns exactly like torch.triu_indices / torch.tril_indices."""
    i, j = np.meshgrid(np.arange(T), np.arange(T), indexing="ij")
    up = np.where((j > i).reshape(-1))[0]
    lw = np.where((j < i).reshape(-1))[0]
    return up.astype(np.int32), lw.astype(np.int32)


# ---------------------------------------------------------------------------
# Pallas kernel: triangular means over row tiles of the (B*C, H*W) slab
# ---------------------------------------------------------------------------
def _tri_mean_kernel(x_ref, m_ref, o_ref):
    x = x_ref[...].astype(jnp.float32)                                   # (TR, HW)
    o_ref[:, 0:1] = jnp.sum(x * m_ref[0:1, :], axis=-1, keepdims=True)   # upper mean
    o_ref[:, 1:2] = jnp.sum(x * m_ref[1:2, :], axis=-1, keepdims=True)   # lower mean


def _tri_means(x2d, masks):
    """x2d: (R, HW) native dtype; masks: (2, HW) f32 -> (R, 2) f32 [up_mean, lw_mean]."""
    R, HW = x2d.shape
    itemsize = jnp.dtype(x2d.dtype).itemsize

    # Row tile: multiple of 8; keep one input block <= ~6 MiB so the
    # double-buffered pipeline fits comfortably under every chip's scoped VMEM
    # while staying near the HBM roofline.  Cap at 2048 rows.
    tr_cap = max(8, ((6 * 1024 * 1024) // max(HW * itemsize, 1)) // 8 * 8)
    TR = int(min(2048, tr_cap, _round_up(R, 8)))
    grid = (pl.cdiv(R, TR),)   # partial tail block: OOB reads only pollute discarded rows

    out = pl.pallas_call(
        _tri_mean_kernel,
        out_shape=jax.ShapeDtypeStruct((R, 2), jnp.float32),
        grid=grid,
        in_specs=[
            pl.BlockSpec((TR, HW), lambda i: (i, 0)),   # streamed row tiles of x
            pl.BlockSpec((2, HW), lambda i: (0, 0)),    # masks stay resident
        ],
        out_specs=pl.BlockSpec((TR, 2), lambda i: (i, 0)),
        compiler_params=pltpu.CompilerParams(
            dimension_semantics=("parallel",),          # shards row tiles across TCs on v7x
            vmem_limit_bytes=32 * 1024 * 1024,
        ),
        cost_estimate=pl.CostEstimate(
            flops=4 * R * HW,
            transcendentals=0,
            bytes_accessed=R * HW * itemsize + 2 * HW * 4 + R * 2 * 4,
        ),
    )(x2d, masks)
    return out


# ---------------------------------------------------------------------------
# Saliency branch helpers (tiny tensors; plain XLA gather/max)
# ---------------------------------------------------------------------------
def _adaptive_max_pool2d(s, out_h, out_w):
    ri = _adaptive_pool_indices(s.shape[2], out_h)      # (out_h, Kh)
    ci = _adaptive_pool_indices(s.shape[3], out_w)      # (out_w, Kw)
    t = jnp.max(s[:, :, ri, :], axis=3)                 # (B, C, out_h, W)
    t = jnp.max(t[:, :, :, ci], axis=4)                 # (B, C, out_h, out_w)
    return t


# ---------------------------------------------------------------------------
# TriangularPattern forward
# ---------------------------------------------------------------------------
def triangular_pattern(x, s=None, *, flip=False, sal_size=56):
    B, C, H, W = x.shape
    masks = _triangular_mean_masks(H, W, flip)
    feats = _tri_means(x.reshape(B * C, H * W), masks)          # (B*C, 2) = [up, lw]
    fused = feats.reshape(B, C, 2)[..., None]                   # (B, C, 2, 1)

    if s is None:
        return fused

    if flip:
        s = jnp.flip(s, axis=3)
    T = int(sal_size * 3 / 4)
    # TODO(synk): adaptive max-pool (uneven windows) + triangular gather act on a tiny
    # downsampled map; left to XLA gather/max instead of in-kernel Pallas gathers.
    pooled = _adaptive_max_pool2d(s, T, T)                      # (B, Cs, T, T)
    Bs, Cs = pooled.shape[0], pooled.shape[1]
    up_idx, lw_idx = _triangular_flat_indices(T)
    p2 = pooled.reshape(Bs, Cs, T * T)
    up_sal = p2[:, :, up_idx].reshape(Bs, -1)                   # (B, Cs*N)
    lw_sal = p2[:, :, lw_idx].reshape(Bs, -1)                   # (B, Cs*N)
    fused_sal = jnp.stack([up_sal, lw_sal], axis=2)[..., None]  # (B, Cs*N, 2, 1)
    return fused, fused_sal


# ---------------------------------------------------------------------------
# Pure-numpy reference mirroring the PyTorch module (for validation)
# ---------------------------------------------------------------------------
def _ref_forward(x, s, flip, sal_size):
    x = np.asarray(x, np.float64)
    if flip:
        x = x[:, :, :, ::-1]
    H, W = x.shape[2], x.shape[3]
    ui = np.triu_indices(H, k=1, m=W)
    li = np.tril_indices(H, k=-1, m=W)
    up_feat = x[:, :, ui[0], ui[1]].mean(axis=2)
    lw_feat = x[:, :, li[0], li[1]].mean(axis=2)
    fused = np.stack([up_feat, lw_feat], axis=2)[..., None]
    if s is None:
        return fused

    s = np.asarray(s, np.float64)
    if flip:
        s = s[:, :, :, ::-1]
    T = int(sal_size * 3 / 4)
    B, C, Hs, Ws = s.shape
    pooled = np.zeros((B, C, T, T), np.float64)
    for i in range(T):                                  # naive AdaptiveMaxPool2d
        hs = (i * Hs) // T
        he = ((i + 1) * Hs + T - 1) // T
        for j in range(T):
            ws = (j * Ws) // T
            we = ((j + 1) * Ws + T - 1) // T
            pooled[:, :, i, j] = s[:, :, hs:he, ws:we].max(axis=(2, 3))
    sui = np.triu_indices(T, k=1)
    sli = np.tril_indices(T, k=-1)
    up_sal = pooled[:, :, sui[0], sui[1]].reshape(B, -1)
    lw_sal = pooled[:, :, sli[0], sli[1]].reshape(B, -1)
    fused_sal = np.stack([up_sal, lw_sal], axis=2)[..., None]
    return fused, fused_sal


if __name__ == "__main__":
    key = jax.random.PRNGKey(0)
    kx, ks, k2, k3 = jax.random.split(key, 4)
    x = jax.random.normal(kx, (2, 4, 16, 16), dtype=jnp.float32)   # feature map
    s = jax.random.normal(ks, (2, 1, 8, 8), dtype=jnp.float32)     # saliency map
    sal_size = 8                                                   # downsample target = 6

    for flip in (False, True):
        fused, fused_sal = triangular_pattern(x, s, flip=flip, sal_size=sal_size)
        jax.block_until_ready((fused, fused_sal))
        ref_fused, ref_sal = _ref_forward(x, s, flip, sal_size)
        assert fused.shape == ref_fused.shape, (fused.shape, ref_fused.shape)
        assert fused_sal.shape == ref_sal.shape, (fused_sal.shape, ref_sal.shape)
        np.testing.assert_allclose(np.asarray(fused), ref_fused, rtol=1e-5, atol=1e-5)
        np.testing.assert_allclose(np.asarray(fused_sal), ref_sal, rtol=1e-5, atol=1e-5)

    # Partial tail block (B*C not a multiple of the row tile) + non-multiple-of-128 H*W.
    x2 = jax.random.normal(k2, (2, 5, 12, 12), dtype=jnp.float32)
    fused2 = triangular_pattern(x2, None)
    jax.block_until_ready(fused2)
    np.testing.assert_allclose(np.asarray(fused2), _ref_forward(x2, None, False, 8),
                               rtol=1e-5, atol=1e-5)

    # Non-square feature map (H != W), with flip.
    x3 = jax.random.normal(k3, (1, 3, 8, 16), dtype=jnp.float32)
    fused3 = triangular_pattern(x3, None, flip=True)
    jax.block_until_ready(fused3)
    np.testing.assert_allclose(np.asarray(fused3), _ref_forward(x3, None, True, 8),
                               rtol=1e-5, atol=1e-5)

    fused_only = triangular_pattern(x, None)
    jax.block_until_ready(fused_only)
    assert fused_only.shape == (2, 4, 2, 1)

    print("KERNEL_OK")
</pallas_src>

<mosaic_0001>
module attributes {stable_mosaic.version = 11 : i64} {
  func.func @_tri_mean_kernel(%arg0: i32, %arg1: memref<8x256xf32, #tpu.memory_space<vmem>>, %arg2: memref<2x256xf32, #tpu.memory_space<vmem>>, %arg3: memref<8x2xf32, #tpu.memory_space<vmem>>) attributes {dimension_semantics = [#tpu.dimension_semantics<parallel>], iteration_bounds = array<i64: 1>, scalar_prefetch = 0 : i64, scratch_operands = 0 : i64, tpu.core_type = #tpu.core_type<tc>, window_params = [{transform_indices = @transform_0, window_bounds = array<i64: 8, 256>}, {pipeline_mode = #tpu.pipeline_mode<synchronous>, transform_indices = @transform_1, window_bounds = array<i64: 2, 256>}, {transform_indices = @transform_2, window_bounds = array<i64: 8, 2>}]} {
    %c0 = arith.constant 0 : index
    %c0_0 = arith.constant 0 : index
    %0 = vector.load %arg1[%c0, %c0_0] : memref<8x256xf32, #tpu.memory_space<vmem>>, vector<8x256xf32>
    %c0_1 = arith.constant 0 : index
    %c0_2 = arith.constant 0 : index
    %1 = vector.load %arg2[%c0_1, %c0_2] : memref<2x256xf32, #tpu.memory_space<vmem>>, vector<1x256xf32>
    %2 = vector.broadcast %1 : vector<1x256xf32> to vector<8x256xf32>
    %3 = arith.mulf %0, %2 : vector<8x256xf32>
    %cst = arith.constant dense<0.000000e+00> : vector<8xf32>
    %4 = vector.multi_reduction <add>, %3, %cst [1] : vector<8x256xf32> to vector<8xf32>
    %5 = vector.shape_cast %4 : vector<8xf32> to vector<8x1xf32>
    %c0_3 = arith.constant 0 : index
    %c0_4 = arith.constant 0 : index
    %6 = vector.load %arg3[%c0_3, %c0_4] : memref<8x2xf32, #tpu.memory_space<vmem>>, vector<8x1xf32>
    tpu.vector_store %arg3[%c0_3, %c0_4], %5 {strides = array<i32>} : memref<8x2xf32, #tpu.memory_space<vmem>>, vector<8x1xf32>,
    %c1 = arith.constant 1 : index
    %c0_5 = arith.constant 0 : index
    %7 = vector.load %arg2[%c1, %c0_5] : memref<2x256xf32, #tpu.memory_space<vmem>>, vector<1x256xf32>
    %8 = vector.broadcast %7 : vector<1x256xf32> to vector<8x256xf32>
    %9 = arith.mulf %0, %8 : vector<8x256xf32>
    %cst_6 = arith.constant dense<0.000000e+00> : vector<8xf32>
    %10 = vector.multi_reduction <add>, %9, %cst_6 [1] : vector<8x256xf32> to vector<8xf32>
    %11 = vector.shape_cast %10 : vector<8xf32> to vector<8x1xf32>
    %c0_7 = arith.constant 0 : index
    %c1_8 = arith.constant 1 : index
    %12 = vector.load %arg3[%c0_7, %c1_8] : memref<8x2xf32, #tpu.memory_space<vmem>>, vector<8x1xf32>
    tpu.vector_store %arg3[%c0_7, %c1_8], %11 {strides = array<i32>} : memref<8x2xf32, #tpu.memory_space<vmem>>, vector<8x1xf32>,
    return
  }
  func.func @transform_0(%arg0: i32) -> (i32, i32) {
    %c0_i32 = arith.constant 0 : i32
    %c0_i32_0 = arith.constant 0 : i32
    return %arg0, %c0_i32 : i32, i32
  }
  func.func @transform_1(%arg0: i32) -> (i32, i32) {
    %c0_i32 = arith.constant 0 : i32
    %c0_i32_0 = arith.constant 0 : i32
    %c0_i32_1 = arith.constant 0 : i32
    return %c0_i32, %c0_i32_0 : i32, i32
  }
  func.func @transform_2(%arg0: i32) -> (i32, i32) {
    %c0_i32 = arith.constant 0 : i32
    %c0_i32_0 = arith.constant 0 : i32
    return %arg0, %c0_i32 : i32, i32
  }
}

</mosaic_0001>

<bundles_post_ra>
// kernel: tpu_custom_call.1
= control target key start
LH: loop header
LB: loop body
LE: loop exit
PB: predicated region body
PF: predicated region fallthrough
CT: control target
= control target key end

     0   :  { %7 = vsyncpa [#allocation3], 0  ;;  %s157_s0 = inlined_call_operand.hbm [shape: f32[8,256], index: 0, kind: input, shape index: {}]   ;;  %s158_s1 = inlined_call_operand.hbm [shape: f32[2,256], index: 1, kind: input, shape index: {}]   ;;  %s159_s2 = inlined_call_operand.vmem [shape: f32[8,2], index: 2, kind: output, shape index: {}]  }
   0x1   :  { %8 = vsyncpa [#allocation5], 0  ;;  %s128_s9 = smov [#allocation2]   ;;  %s129_s11 = smov [#allocation4]  }
   0x2   :  { %s15_s10 = sshll.u32 %s128_s9, 4  ;;  %s25_s12 = sshll.u32 %s129_s11, 4  ;;  %s16_s10 = int_to_ptr.vmem [resolvable:$true] %s15_s10  ;;  %s26_s12 = int_to_ptr.vmem [resolvable:$true] %s25_s12 }
   0x3   :  { %s92_s13 = scalar_lea.vmem %s16_s10, 256  ;;  %p97_p1 = scmp.lt.s32.totalorder %s16_s10, %s16_s10 }
   0x4   :  { %p93_p0 = scmp.ne.s32.totalorder %s16_s10, %s92_s13  ;;  %p98_p2 = scmp.lt.s32.totalorder %s92_s13, %s92_s13 }
   0x6   :  { %p99_p3 = por %p98_p2, %p97_p1 }
   0x8   :  { %p100_p4 = pnand %p99_p3, %p93_p0 }
   0xa   :  { %103 = shalt.err (!%p100_p4)
}
   0xb   :  { %18 = dma.hbm_to_vmem [thread:$0]  %s157_s0, 256, %s16_s10, [#allocation3]  }
   0xc   :  { %s112_s16 = scalar_lea.vmem %s26_s12, 64  ;;  %p117_p6 = scmp.lt.s32.totalorder %s26_s12, %s26_s12 }
   0xd   :  { %p113_p5 = scmp.ne.s32.totalorder %s26_s12, %s112_s16  ;;  %p118_p7 = scmp.lt.s32.totalorder %s112_s16, %s112_s16 }
   0xf   :  { %p119_p8 = por %p118_p7, %p117_p6 }
  0x11   :  { %p120_p9 = pnand %p119_p8, %p113_p5 }
  0x13   :  { %123 = shalt.err (!%p120_p9)
}
  0x14   :  { %28 = dma.hbm_to_vmem [thread:$0]  %s158_s1, 64, %s26_s12, [#allocation5]  }
  0x15   :  { %124 = dma.done.wait [#allocation3], 256  }
  0x16   :  { %125 = vsyncadd [#allocation3], 4294967040 }
  0x17   :  { %126 = dma.done.wait [#allocation5], 64  }
  0x18   :  { %127 = vsyncadd [#allocation5], 4294967232  ;;  %v39_v0 = vlaneseq  ;;  %v35_v4 = vld [vmem:[#allocation2] sm:$0xff]  ;;  %v36_v5 = vld [vmem:[#allocation2 + $0x8] sm:$0xff]  ;;  %vm54_vm0 = vcmask 7168   ;;  %vm74_vm1 = vcmask 15368  }
  0x19   :  { %v37_v6 = vld [vmem:[#allocation4] ss:$2 sm:$0x3]  ;;  %v57_v9 = vld [vmem:[#allocation4 + $0x1] ss:$2 sm:$0x3] }
  0x1a   :  { %v40_v1 = vshrl.u32 %v39_v0, 7 }
  0x1c   :  { %v41_v2 = vsub.s32 0, %v40_v1  ;;  %v45_v3 = vsub.s32 1, %v40_v1 }
  0x1e   :  { %v42_v7 = vrot.slane %v37_v6, %v41_v2  ;;  %v46_v8 = vrot.slane %v37_v6, %v45_v3  ;;  %v62_v10 = vrot.slane %v57_v9, %v41_v2  ;;  %v66_v11 = vrot.slane %v57_v9, %v45_v3 }
  0x20   :  { %v49_v12 = vmul.f32 %v42_v7, %v35_v4  ;;  %v50_v13 = vmul.f32 %v46_v8, %v36_v5  ;;  %v69_v14 = vmul.f32 %v62_v10, %v35_v4  ;;  %v70_v15 = vmul.f32 %v66_v11, %v36_v5 }
  0x22   :  { %v51_v16 = vadd.f32 %v50_v13, %v49_v12  ;;  %v71_v17 = vadd.f32 %v70_v15, %v69_v14 }
  0x24   :  { %52 = vadd.xlane.f32.xlu0 %v51_v16 }
  0x28   :  { %72 = vadd.xlane.f32.xlu0 %v71_v17 }
  0xad   :  { %v53_v18 = vpop.xlane.xlu0 %52 }
  0xae   :  { %55 = vst.msk [vmem:[%s159_s2] sm:$0xff] %vm54_vm0, %v53_v18 }
  0xb1   :  { %v73_v19 = vpop.xlane.xlu0 %72 }
  0xb2   :  { %75 = vst.msk [vmem:[%s159_s2] sm:$0xff] %vm74_vm1, %v73_v19 }
  0xb3   :  { %80 = vsyncpa [#allocation3], 1 }
  0xb4   :  { %81 = vsyncpa [#allocation5], 1 }

</bundles_post_ra>
